<compile_context>
chip_gen: v7x
topology: tpu7x:2x2x1
jax: 0.10.0
libtpu: 0.0.40
codegen_flags: <defaults>
</compile_context>

<pallas_src>
import functools

import jax
import jax.numpy as jnp
import numpy as np
from jax.experimental import pallas as pl
from jax.experimental.pallas import tpu as pltpu


def _round_up(n, m):
    return ((n + m - 1) // m) * m


def _cdiv(a, b):
    return -(-a // b)


_SINGLE_BUFFER_FALLBACK_ERRORS = (TypeError, ValueError, NotImplementedError)
if hasattr(pltpu, "LoweringException"):
    _SINGLE_BUFFER_FALLBACK_ERRORS = _SINGLE_BUFFER_FALLBACK_ERRORS + (pltpu.LoweringException,)


def _mp_kernel(x_ref, dT_ref, d_ref, g_ref, coef_ref, sq_ref, l1_ref, *, sparsity):
    """One grid step = TM samples. Greedy matching pursuit + per-block loss partials."""
    tm, kp = coef_ref.shape
    mm_dtype = d_ref.dtype                         # bf16 iff the wrapper cast the dictionary

    # inner_products for iteration 0:  x @ dict.T  in natural (TM,D)@(D,Kp) MXU layout.
    ip = jnp.dot(x_ref[...].astype(mm_dtype), dT_ref[...],
                 preferred_element_type=jnp.float32)                      # (TM, Kp) f32

    lane = jax.lax.broadcasted_iota(jnp.int32, (tm, kp), 1)
    selected = jnp.zeros((tm, kp), jnp.bool_)

    for t in range(sparsity):                                             # small static unroll
        # Padded atoms are exactly zero -> score exactly 0; no validity mask needed because
        # the min-lane tie-break below always resolves to a real atom (lane < K).
        scores = jnp.abs(ip)
        m = jnp.max(scores, axis=-1, keepdims=True)                       # (TM, 1)
        idx = jnp.min(jnp.where(scores == m, lane, kp), axis=-1, keepdims=True)
        onehot = lane == idx                                              # (TM, Kp)
        selected = jnp.logical_or(selected, onehot)
        if t + 1 < sparsity:
            # residual update folded through the Gram matrix:
            #   ip <- ip - ip[idx] * (dict[idx] @ dict.T)
            picked = jnp.where(onehot, ip, 0.0)
            ip = ip - jnp.dot(picked.astype(mm_dtype), g_ref[...],
                              preferred_element_type=jnp.float32)

    coeffs = jnp.where(selected, ip, 0.0)          # final inner products at selected atoms
    coef_ref[...] = coeffs

    # x_reconstructed = coefficients @ dictionary; compare against x re-read from VMEM so x
    # never stays live across the selection loop (fewer spills).
    x_rec = jnp.dot(coeffs.astype(mm_dtype), d_ref[...],
                    preferred_element_type=jnp.float32)                   # (TM, D)
    err = x_rec - x_ref[...]

    # Lane-dense per-block partials (scalar replicated across the 128 lanes).
    sq_ref[...] = jnp.broadcast_to(jnp.sum(err * err), sq_ref.shape)
    l1_ref[...] = jnp.broadcast_to(jnp.sum(jnp.abs(coeffs)), l1_ref.shape)


def _const_block_spec(shape, single_buffer):
    index_map = lambda i: (0,) * len(shape)
    if single_buffer:
        try:
            # Constant-index block: one resident copy is enough; halves its VMEM footprint.
            return pl.BlockSpec(shape, index_map, pipeline_mode=pl.Buffered(1))
        except (AttributeError, TypeError):
            pass
    return pl.BlockSpec(shape, index_map)


def _make_call(kernel, *, Bp, D, Kp, TM, G, mm_itemsize, flops, bytes_accessed,
               single_buffer_dict):
    # Explicit scoped-VMEM budget: resident dictionary operands + double-buffered x/coef
    # blocks + headroom for spills / internal scratch.  Defaults (16 MiB v5e, 32 MiB v6e/v7x)
    # otherwise bind long before physical VMEM is full; cap below v7x's 64 MiB physical.
    dict_bufs = 1 if single_buffer_dict else 2
    dict_bytes = dict_bufs * mm_itemsize * (2 * D * Kp + Kp * Kp)
    io_bytes = 2 * 4 * (TM * D + TM * Kp + 2 * 128)
    vmem_needed = dict_bytes + io_bytes + (8 << 20)
    vmem_limit = int(min(max(vmem_needed, 32 << 20), 56 << 20))

    return pl.pallas_call(
        kernel,
        out_shape=(
            jax.ShapeDtypeStruct((Bp, Kp), jnp.float32),   # coefficients (row/atom padded)
            jax.ShapeDtypeStruct((G, 128), jnp.float32),   # per-block sum of squared error
            jax.ShapeDtypeStruct((G, 128), jnp.float32),   # per-block L1 of coefficients
        ),
        grid_spec=pltpu.PrefetchScalarGridSpec(
            num_scalar_prefetch=0,
            grid=(G,),
            in_specs=[
                pl.BlockSpec((TM, D), lambda i: (i, 0)),                 # TM samples / step
                _const_block_spec((D, Kp), single_buffer_dict),          # dict^T  (scores)
                _const_block_spec((Kp, D), single_buffer_dict),          # dict    (x_rec)
                _const_block_spec((Kp, Kp), single_buffer_dict),         # Gram    (updates)
            ],
            out_specs=[
                pl.BlockSpec((TM, Kp), lambda i: (i, 0)),
                pl.BlockSpec((1, 128), lambda i: (i, 0)),                # lane-dense partials:
                pl.BlockSpec((1, 128), lambda i: (i, 0)),                # no shared accumulator
            ],
        ),
        compiler_params=pltpu.CompilerParams(
            dimension_semantics=("parallel",),             # batch blocks are independent
            vmem_limit_bytes=vmem_limit),
        cost_estimate=pl.CostEstimate(flops=flops, transcendentals=0,
                                      bytes_accessed=bytes_accessed),
    )


def sparse_representation_loss(x, dictionary, *, sparsity=3, sparsity_weight=0.1,
                               block_rows=None, matmul_in_bf16=False,
                               single_buffer_dict=None):
    x = x.astype(jnp.float32)
    dictionary = dictionary.astype(jnp.float32)
    B, D = x.shape
    K, D2 = dictionary.shape
    assert D == D2

    # Pad atoms to a lane multiple; padded (all-zero) atoms score exactly 0 and are never
    # selected ahead of a real atom (min-lane tie-break).
    Kp = _round_up(K, 128)

    if block_rows is None:
        if B <= 8:
            block_rows = 8
        else:
            # Target ~512-row tiles (amortizes per-step overhead + the selection chain at the
            # module's small default D/K) while keeping >= 2 grid steps so both v7x TCs work.
            g_target = max(2, _cdiv(B, 512))
            block_rows = _round_up(_cdiv(B, g_target), 8)
    TM = max(8, _round_up(block_rows, 8))
    Bp = _round_up(B, TM)
    G = Bp // TM

    # Zero-padded rows contribute exactly 0 to both loss terms (x=0 -> ip=0 -> coeffs=0).
    # Skip the padding copy entirely when the batch already tiles evenly.
    x_pad = x if Bp == B else jnp.zeros((Bp, D), jnp.float32).at[:B].set(x)

    d_pad = dictionary if Kp == K else jnp.zeros((Kp, D), jnp.float32).at[:K].set(dictionary)
    dT_pad = d_pad.T                                     # (D, Kp)  score-matmul layout
    gram = d_pad @ d_pad.T                               # (Kp, Kp) Gram matrix (f32)

    # Optional bf16 MXU operands (3-6x matmul throughput on all generations); off by default
    # because abs-argmax near-ties can flip atom selection relative to the f32 reference.
    mm_dtype = jnp.bfloat16 if matmul_in_bf16 else jnp.float32
    mm_itemsize = jnp.dtype(mm_dtype).itemsize
    dT_in = dT_pad.astype(mm_dtype)
    d_in = d_pad.astype(mm_dtype)
    gram_in = gram.astype(mm_dtype)

    if single_buffer_dict is None:
        # Single-buffering the constant-index dictionary blocks only matters once they are
        # big enough to pressure VMEM (notably v7x's 64 MiB).
        single_buffer_dict = mm_itemsize * (2 * D * Kp + Kp * Kp) > (8 << 20)

    kernel = functools.partial(_mp_kernel, sparsity=sparsity)

    flops = int(2 * Bp * Kp * (2 * D + Kp * max(sparsity - 1, 0)))
    bytes_accessed = int(4 * Bp * (D + Kp) + mm_itemsize * (2 * D * Kp + Kp * Kp)
                         + 4 * 2 * G * 128)

    def run(sb):
        call = _make_call(kernel, Bp=Bp, D=D, Kp=Kp, TM=TM, G=G, mm_itemsize=mm_itemsize,
                          flops=flops, bytes_accessed=bytes_accessed, single_buffer_dict=sb)
        return call(x_pad, dT_in, d_in, gram_in)

    if single_buffer_dict:
        try:
            coeffs, sq, l1 = run(True)
        except _SINGLE_BUFFER_FALLBACK_ERRORS:
            # This JAX build rejected pipeline_mode=pl.Buffered(1); same semantics with the
            # default double-buffered dictionary blocks.
            coeffs, sq, l1 = run(False)
    else:
        coeffs, sq, l1 = run(False)

    reconstruction_loss = jnp.sum(sq[:, 0]) / (B * D)    # nn.MSELoss() mean reduction
    sparsity_loss = jnp.sum(l1[:, 0]) / B                # ||C||_1 / batch
    return reconstruction_loss + sparsity_weight * sparsity_loss, coeffs[:B, :K]


def _reference_loss(x, dictionary, *, sparsity=3, sparsity_weight=0.1):
    """Pure-JAX reference with identical (intended) semantics (residual formulation)."""
    B, D = x.shape
    K = dictionary.shape[0]
    coefficients = jnp.zeros((B, K), jnp.float32)
    for i in range(B):
        residual = x[i]
        selected = jnp.zeros((K,), jnp.bool_)
        ip = jnp.zeros((K,), jnp.float32)
        for _ in range(sparsity):
            ip = residual @ dictionary.T
            idx = jnp.argmax(jnp.abs(ip))
            selected = selected.at[idx].set(True)
            residual = residual - ip[idx] * dictionary[idx]
        coefficients = coefficients.at[i].set(jnp.where(selected, ip, 0.0))
    x_rec = coefficients @ dictionary
    recon = jnp.mean((x_rec - x) ** 2)
    l1 = jnp.sum(jnp.abs(coefficients)) / B
    return recon + sparsity_weight * l1


if __name__ == "__main__":
    key = jax.random.PRNGKey(0)
    kx, kd = jax.random.split(key)
    B, D, K = 4, 128, 100                       # dictionary_size = 100 (module default)
    x = jax.random.normal(kx, (B, D), jnp.float32)
    dictionary = jax.random.normal(kd, (K, D), jnp.float32)

    loss, _ = sparse_representation_loss(x, dictionary, sparsity=3, sparsity_weight=0.1)
    loss = jax.block_until_ready(loss)

    ref = jax.block_until_ready(_reference_loss(x, dictionary, sparsity=3,
                                                sparsity_weight=0.1))
    np.testing.assert_allclose(np.asarray(loss), np.asarray(ref), rtol=1e-3, atol=1e-3)

    print("KERNEL_OK")
</pallas_src>

<mosaic_0001>
module attributes {stable_mosaic.version = 11 : i64} {
  func.func @_mp_kernel(%arg0: i32, %arg1: memref<8x128xf32, #tpu.memory_space<vmem>>, %arg2: memref<128x128xf32, #tpu.memory_space<vmem>>, %arg3: memref<128x128xf32, #tpu.memory_space<vmem>>, %arg4: memref<128x128xf32, #tpu.memory_space<vmem>>, %arg5: memref<8x128xf32, #tpu.memory_space<vmem>>, %arg6: memref<1x128xf32, #tpu.memory_space<vmem>>, %arg7: memref<1x128xf32, #tpu.memory_space<vmem>>) attributes {dimension_semantics = [#tpu.dimension_semantics<parallel>], iteration_bounds = array<i64: 1>, scalar_prefetch = 0 : i64, scratch_operands = 0 : i64, tpu.core_type = #tpu.core_type<tc>, window_params = [{transform_indices = @transform_0, window_bounds = array<i64: 8, 128>}, {pipeline_mode = #tpu.pipeline_mode<synchronous>, transform_indices = @transform_1, window_bounds = array<i64: 128, 128>}, {pipeline_mode = #tpu.pipeline_mode<synchronous>, transform_indices = @transform_2, window_bounds = array<i64: 128, 128>}, {pipeline_mode = #tpu.pipeline_mode<synchronous>, transform_indices = @transform_3, window_bounds = array<i64: 128, 128>}, {transform_indices = @transform_4, window_bounds = array<i64: 8, 128>}, {transform_indices = @transform_5, window_bounds = array<i64: 1, 128>}, {transform_indices = @transform_6, window_bounds = array<i64: 1, 128>}]} {
    %c0 = arith.constant 0 : index
    %c0_0 = arith.constant 0 : index
    %0 = vector.load %arg1[%c0, %c0_0] : memref<8x128xf32, #tpu.memory_space<vmem>>, vector<8x128xf32>
    %c0_1 = arith.constant 0 : index
    %c0_2 = arith.constant 0 : index
    %1 = vector.load %arg2[%c0_1, %c0_2] : memref<128x128xf32, #tpu.memory_space<vmem>>, vector<128x128xf32>
    %cst = arith.constant dense<0.000000e+00> : vector<8x128xf32>
    %2 = tpu.matmul %0, %1, %cst {dimension_numbers = #tpu.dot_dimension_numbers<[1], [0], [0], [1], [0, 0, 1, 1], [], []>} : vector<8x128xf32>, vector<128x128xf32>, vector<8x128xf32> -> vector<8x128xf32>
    %3 = tpu.iota {dimensions = array<i32: 1>} : vector<8x128xi32>
    %false = arith.constant false
    %4 = vector.broadcast %false : i1 to vector<8x128xi1>
    %5 = math.absf %2 : vector<8x128xf32>
    %cst_3 = arith.constant dense<0xFF800000> : vector<8xf32>
    %6 = vector.multi_reduction <maximumf>, %5, %cst_3 [1] : vector<8x128xf32> to vector<8xf32>
    %7 = vector.shape_cast %6 : vector<8xf32> to vector<8x1xf32>
    %8 = vector.broadcast %7 : vector<8x1xf32> to vector<8x128xf32>
    %9 = arith.cmpf oeq, %5, %8 : vector<8x128xf32>
    %c128_i32 = arith.constant 128 : i32
    %10 = vector.broadcast %c128_i32 : i32 to vector<8x128xi32>
    %11 = arith.select %9, %3, %10 : vector<8x128xi1>, vector<8x128xi32>
    %cst_4 = arith.constant dense<2147483647> : vector<8xi32>
    %12 = vector.multi_reduction <minsi>, %11, %cst_4 [1] : vector<8x128xi32> to vector<8xi32>
    %13 = vector.shape_cast %12 : vector<8xi32> to vector<8x1xi32>
    %14 = vector.broadcast %13 : vector<8x1xi32> to vector<8x128xi32>
    %15 = arith.cmpi eq, %3, %14 : vector<8x128xi32>
    %16 = arith.ori %4, %15 : vector<8x128xi1>
    %cst_5 = arith.constant 0.000000e+00 : f32
    %17 = vector.broadcast %cst_5 : f32 to vector<8x128xf32>
    %18 = arith.select %15, %2, %17 : vector<8x128xi1>, vector<8x128xf32>
    %c0_6 = arith.constant 0 : index
    %c0_7 = arith.constant 0 : index
    %19 = vector.load %arg4[%c0_6, %c0_7] : memref<128x128xf32, #tpu.memory_space<vmem>>, vector<128x128xf32>
    %cst_8 = arith.constant dense<0.000000e+00> : vector<8x128xf32>
    %20 = tpu.matmul %18, %19, %cst_8 {dimension_numbers = #tpu.dot_dimension_numbers<[1], [0], [0], [1], [0, 0, 1, 1], [], []>} : vector<8x128xf32>, vector<128x128xf32>, vector<8x128xf32> -> vector<8x128xf32>
    %21 = arith.subf %2, %20 : vector<8x128xf32>
    %22 = math.absf %21 : vector<8x128xf32>
    %cst_9 = arith.constant dense<0xFF800000> : vector<8xf32>
    %23 = vector.multi_reduction <maximumf>, %22, %cst_9 [1] : vector<8x128xf32> to vector<8xf32>
    %24 = vector.shape_cast %23 : vector<8xf32> to vector<8x1xf32>
    %25 = vector.broadcast %24 : vector<8x1xf32> to vector<8x128xf32>
    %26 = arith.cmpf oeq, %22, %25 : vector<8x128xf32>
    %c128_i32_10 = arith.constant 128 : i32
    %27 = vector.broadcast %c128_i32_10 : i32 to vector<8x128xi32>
    %28 = arith.select %26, %3, %27 : vector<8x128xi1>, vector<8x128xi32>
    %cst_11 = arith.constant dense<2147483647> : vector<8xi32>
    %29 = vector.multi_reduction <minsi>, %28, %cst_11 [1] : vector<8x128xi32> to vector<8xi32>
    %30 = vector.shape_cast %29 : vector<8xi32> to vector<8x1xi32>
    %31 = vector.broadcast %30 : vector<8x1xi32> to vector<8x128xi32>
    %32 = arith.cmpi eq, %3, %31 : vector<8x128xi32>
    %33 = arith.ori %16, %32 : vector<8x128xi1>
    %cst_12 = arith.constant 0.000000e+00 : f32
    %34 = vector.broadcast %cst_12 : f32 to vector<8x128xf32>
    %35 = arith.select %32, %21, %34 : vector<8x128xi1>, vector<8x128xf32>
    %c0_13 = arith.constant 0 : index
    %c0_14 = arith.constant 0 : index
    %36 = vector.load %arg4[%c0_13, %c0_14] : memref<128x128xf32, #tpu.memory_space<vmem>>, vector<128x128xf32>
    %cst_15 = arith.constant dense<0.000000e+00> : vector<8x128xf32>
    %37 = tpu.matmul %35, %36, %cst_15 {dimension_numbers = #tpu.dot_dimension_numbers<[1], [0], [0], [1], [0, 0, 1, 1], [], []>} : vector<8x128xf32>, vector<128x128xf32>, vector<8x128xf32> -> vector<8x128xf32>
    %38 = arith.subf %21, %37 : vector<8x128xf32>
    %39 = math.absf %38 : vector<8x128xf32>
    %cst_16 = arith.constant dense<0xFF800000> : vector<8xf32>
    %40 = vector.multi_reduction <maximumf>, %39, %cst_16 [1] : vector<8x128xf32> to vector<8xf32>
    %41 = vector.shape_cast %40 : vector<8xf32> to vector<8x1xf32>
    %42 = vector.broadcast %41 : vector<8x1xf32> to vector<8x128xf32>
    %43 = arith.cmpf oeq, %39, %42 : vector<8x128xf32>
    %c128_i32_17 = arith.constant 128 : i32
    %44 = vector.broadcast %c128_i32_17 : i32 to vector<8x128xi32>
    %45 = arith.select %43, %3, %44 : vector<8x128xi1>, vector<8x128xi32>
    %cst_18 = arith.constant dense<2147483647> : vector<8xi32>
    %46 = vector.multi_reduction <minsi>, %45, %cst_18 [1] : vector<8x128xi32> to vector<8xi32>
    %47 = vector.shape_cast %46 : vector<8xi32> to vector<8x1xi32>
    %48 = vector.broadcast %47 : vector<8x1xi32> to vector<8x128xi32>
    %49 = arith.cmpi eq, %3, %48 : vector<8x128xi32>
    %50 = arith.ori %33, %49 : vector<8x128xi1>
    %cst_19 = arith.constant 0.000000e+00 : f32
    %51 = vector.broadcast %cst_19 : f32 to vector<8x128xf32>
    %52 = arith.select %50, %38, %51 : vector<8x128xi1>, vector<8x128xf32>
    %c0_20 = arith.constant 0 : index
    %c0_21 = arith.constant 0 : index
    %53 = vector.load %arg5[%c0_20, %c0_21] : memref<8x128xf32, #tpu.memory_space<vmem>>, vector<8x128xf32>
    tpu.vector_store %arg5[%c0_20, %c0_21], %52 {strides = array<i32>} : memref<8x128xf32, #tpu.memory_space<vmem>>, vector<8x128xf32>,
    %c0_22 = arith.constant 0 : index
    %c0_23 = arith.constant 0 : index
    %54 = vector.load %arg3[%c0_22, %c0_23] : memref<128x128xf32, #tpu.memory_space<vmem>>, vector<128x128xf32>
    %cst_24 = arith.constant dense<0.000000e+00> : vector<8x128xf32>
    %55 = tpu.matmul %52, %54, %cst_24 {dimension_numbers = #tpu.dot_dimension_numbers<[1], [0], [0], [1], [0, 0, 1, 1], [], []>} : vector<8x128xf32>, vector<128x128xf32>, vector<8x128xf32> -> vector<8x128xf32>
    %c0_25 = arith.constant 0 : index
    %c0_26 = arith.constant 0 : index
    %56 = vector.load %arg1[%c0_25, %c0_26] : memref<8x128xf32, #tpu.memory_space<vmem>>, vector<8x128xf32>
    %57 = arith.subf %55, %56 : vector<8x128xf32>
    %58 = arith.mulf %57, %57 : vector<8x128xf32>
    %59 = vector.shape_cast %58 : vector<8x128xf32> to vector<1x8x128xf32>
    %cst_27 = arith.constant dense<0.000000e+00> : vector<1xf32>
    %60 = vector.multi_reduction <add>, %59, %cst_27 [1, 2] : vector<1x8x128xf32> to vector<1xf32>
    %61 = vector.shape_cast %60 : vector<1xf32> to vector<1x1x1xf32>
    %62 = vector.extract %61[0, 0, 0] : f32 from vector<1x1x1xf32>
    %63 = vector.broadcast %62 : f32 to vector<1x128xf32>
    %c0_28 = arith.constant 0 : index
    %c0_29 = arith.constant 0 : index
    %64 = vector.load %arg6[%c0_28, %c0_29] : memref<1x128xf32, #tpu.memory_space<vmem>>, vector<1x128xf32>
    tpu.vector_store %arg6[%c0_28, %c0_29], %63 {strides = array<i32>} : memref<1x128xf32, #tpu.memory_space<vmem>>, vector<1x128xf32>,
    %65 = math.absf %52 : vector<8x128xf32>
    %66 = vector.shape_cast %65 : vector<8x128xf32> to vector<1x8x128xf32>
    %cst_30 = arith.constant dense<0.000000e+00> : vector<1xf32>
    %67 = vector.multi_reduction <add>, %66, %cst_30 [1, 2] : vector<1x8x128xf32> to vector<1xf32>
    %68 = vector.shape_cast %67 : vector<1xf32> to vector<1x1x1xf32>
    %69 = vector.extract %68[0, 0, 0] : f32 from vector<1x1x1xf32>
    %70 = vector.broadcast %69 : f32 to vector<1x128xf32>
    %c0_31 = arith.constant 0 : index
    %c0_32 = arith.constant 0 : index
    %71 = vector.load %arg7[%c0_31, %c0_32] : memref<1x128xf32, #tpu.memory_space<vmem>>, vector<1x128xf32>
    tpu.vector_store %arg7[%c0_31, %c0_32], %70 {strides = array<i32>} : memref<1x128xf32, #tpu.memory_space<vmem>>, vector<1x128xf32>,
    return
  }
  func.func @transform_0(%arg0: i32) -> (i32, i32) {
    %c0_i32 = arith.constant 0 : i32
    %c0_i32_0 = arith.constant 0 : i32
    return %arg0, %c0_i32 : i32, i32
  }
  func.func @transform_1(%arg0: i32) -> (i32, i32) {
    %c0_i32 = arith.constant 0 : i32
    %c0_i32_0 = arith.constant 0 : i32
    %c0_i32_1 = arith.constant 0 : i32
    return %c0_i32, %c0_i32_0 : i32, i32
  }
  func.func @transform_2(%arg0: i32) -> (i32, i32) {
    %c0_i32 = arith.constant 0 : i32
    %c0_i32_0 = arith.constant 0 : i32
    %c0_i32_1 = arith.constant 0 : i32
    return %c0_i32, %c0_i32_0 : i32, i32
  }
  func.func @transform_3(%arg0: i32) -> (i32, i32) {
    %c0_i32 = arith.constant 0 : i32
    %c0_i32_0 = arith.constant 0 : i32
    %c0_i32_1 = arith.constant 0 : i32
    return %c0_i32, %c0_i32_0 : i32, i32
  }
  func.func @transform_4(%arg0: i32) -> (i32, i32) {
    %c0_i32 = arith.constant 0 : i32
    %c0_i32_0 = arith.constant 0 : i32
    return %arg0, %c0_i32 : i32, i32
  }
  func.func @transform_5(%arg0: i32) -> (i32, i32) {
    %c0_i32 = arith.constant 0 : i32
    %c0_i32_0 = arith.constant 0 : i32
    return %arg0, %c0_i32 : i32, i32
  }
  func.func @transform_6(%arg0: i32) -> (i32, i32) {
    %c0_i32 = arith.constant 0 : i32
    %c0_i32_0 = arith.constant 0 : i32
    return %arg0, %c0_i32 : i32, i32
  }
}

</mosaic_0001>

<bundles_post_ra>
// kernel: tpu_custom_call.1
= control target key start
LH: loop header
LB: loop body
LE: loop exit
PB: predicated region body
PF: predicated region fallthrough
CT: control target
= control target key end

     0   :  { %12 = vsyncpa [#allocation3], 0  ;;  %s1259_s0 = inlined_call_operand.hbm [shape: f32[8,128], index: 0, kind: input, shape index: {}]   ;;  %s1260_s1 = inlined_call_operand.hbm [shape: f32[128,128], index: 1, kind: input, shape index: {}]   ;;  %s1261_s2 = inlined_call_operand.hbm [shape: f32[128,128], index: 2, kind: input, shape index: {}]   ;;  %s1262_s3 = inlined_call_operand.hbm [shape: f32[128,128], index: 3, kind: input, shape index: {}]   ;;  %s1263_s4 = inlined_call_operand.hbm [shape: f32[8,128], index: 4, kind: output, shape index: {0}]   ;;  %s1264_s5 = inlined_call_operand.hbm [shape: f32[1,128], index: 5, kind: output, shape index: {1}]   ;;  %s1265_s6 = inlined_call_operand.hbm [shape: f32[1,128], index: 6, kind: output, shape index: {2}]  }
   0x1   :  { %13 = vsyncpa [#allocation6], 0 }
   0x2   :  { %14 = vsyncpa [#allocation9], 0 }
   0x3   :  { %15 = vsyncpa [#allocation4], 0 }
   0x4   :  { %16 = vsyncpa [#allocation12], 0  ;;  %s1031_s21 = smov [#allocation5]   ;;  %s867_s25 = scalar_lea.hbm %s1260_s1, 2048 }
   0x5   :  { %s32_s22 = sshll.u32 %s1031_s21, 4  ;;  %p868_p0 = scmp.ne.s32.totalorder %s1260_s1, %s867_s25  ;;  %s33_s22 = int_to_ptr.vmem [resolvable:$true] %s32_s22 }
   0x6   :  { %p871_p1 = scmp.lt.u32.totalorder %s867_s25, %s1260_s1 }
   0x8   :  { %p873_p2 = pnand %p871_p1, %p868_p0 }
   0xa   :  { %876 = shalt.err (!%p873_p2)
}
   0xb   :  { %s877_s30 = scalar_lea.vmem %s33_s22, 2048  ;;  %p882_p4 = scmp.lt.s32.totalorder %s33_s22, %s33_s22 }
   0xc   :  { %p878_p3 = scmp.ne.s32.totalorder %s33_s22, %s877_s30  ;;  %p883_p5 = scmp.lt.s32.totalorder %s877_s30, %s877_s30 }
   0xe   :  { %p884_p6 = por %p883_p5, %p882_p4 }
  0x10   :  { %p885_p7 = pnand %p884_p6, %p878_p3 }
  0x12   :  { %888 = shalt.err (!%p885_p7)
}
  0x13   :  { %s1032_s7 = smov 128   ;;  %s1033_s8 = smov 8  }
  0x14   :  { %38 = dma.hbm_to_vmem [thread:$0]  %s1260_s1, 2048, %s33_s22, [#allocation6], %s1032_s7, %s1032_s7, %s1033_s8  }
  0x15   :  { %s1034_s11 = smov [#allocation2]   ;;  %s1035_s13 = smov [#allocation7]  }
  0x16   :  { %s23_s12 = sshll.u32 %s1034_s11, 4  ;;  %s44_s14 = sshll.u32 %s1035_s13, 4  ;;  %s24_s12 = int_to_ptr.vmem [resolvable:$true] %s23_s12  ;;  %s45_s14 = int_to_ptr.vmem [resolvable:$true] %s44_s14 }
  0x17   :  { %s889_s17 = scalar_lea.hbm %s1259_s0, 128 }
  0x18   :  { %p890_p8 = scmp.ne.s32.totalorder %s1259_s0, %s889_s17  ;;  %p893_p9 = scmp.lt.u32.totalorder %s889_s17, %s1259_s0 }
  0x1a   :  { %p895_p10 = pnand %p893_p9, %p890_p8 }
  0x1c   :  { %898 = shalt.err (!%p895_p10)
}
  0x1d   :  { %s899_s1 = scalar_lea.vmem %s24_s12, 128  ;;  %p904_p12 = scmp.lt.s32.totalorder %s24_s12, %s24_s12 }
  0x1e   :  { %p900_p11 = scmp.ne.s32.totalorder %s24_s12, %s899_s1  ;;  %p905_p13 = scmp.lt.s32.totalorder %s899_s1, %s899_s1 }
  0x20   :  { %p906_p0 = por %p905_p13, %p904_p12 }
  0x22   :  { %p907_p1 = pnand %p906_p0, %p900_p11 }
  0x24   :  { %910 = shalt.err (!%p907_p1)
}
  0x25   :  { %26 = dma.hbm_to_vmem [thread:$0]  %s1259_s0, 128, %s24_s12, [#allocation3]  }
  0x26   :  { %s911_s26 = scalar_lea.hbm %s1261_s2, 2048 }
  0x27   :  { %p912_p2 = scmp.ne.s32.totalorder %s1261_s2, %s911_s26  ;;  %p915_p3 = scmp.lt.u32.totalorder %s911_s26, %s1261_s2 }
  0x29   :  { %p917_p4 = pnand %p915_p3, %p912_p2 }
  0x2b   :  { %920 = shalt.err (!%p917_p4)
}
  0x2c   :  { %s921_s9 = scalar_lea.vmem %s45_s14, 2048  ;;  %p926_p6 = scmp.lt.s32.totalorder %s45_s14, %s45_s14 }
  0x2d   :  { %p922_p5 = scmp.ne.s32.totalorder %s45_s14, %s921_s9  ;;  %p927_p7 = scmp.lt.s32.totalorder %s921_s9, %s921_s9 }
  0x2f   :  { %p928_p8 = por %p927_p7, %p926_p6 }
  0x31   :  { %p929_p9 = pnand %p928_p8, %p922_p5 }
  0x33   :  { %932 = shalt.err (!%p929_p9)
}
  0x34   :  { %50 = dma.hbm_to_vmem [thread:$0]  %s1261_s2, 2048, %s45_s14, [#allocation6], %s1032_s7, %s1032_s7, %s1033_s8  }
  0x35   :  { %s1036_s11 = smov [#allocation8]   ;;  %s933_s16 = scalar_lea.hbm %s1262_s3, 2048 }
  0x36   :  { %s56_s12 = sshll.u32 %s1036_s11, 4  ;;  %p934_p10 = scmp.ne.s32.totalorder %s1262_s3, %s933_s16  ;;  %s57_s12 = int_to_ptr.vmem [resolvable:$true] %s56_s12 }
  0x37   :  { %p937_p11 = scmp.lt.u32.totalorder %s933_s16, %s1262_s3 }
  0x39   :  { %p939_p12 = pnand %p937_p11, %p934_p10 }
  0x3b   :  { %942 = shalt.err (!%p939_p12)
}
  0x3c   :  { %s943_s21 = scalar_lea.vmem %s57_s12, 2048  ;;  %p948_p0 = scmp.lt.s32.totalorder %s57_s12, %s57_s12 }
  0x3d   :  { %p944_p13 = scmp.ne.s32.totalorder %s57_s12, %s943_s21  ;;  %p949_p1 = scmp.lt.s32.totalorder %s943_s21, %s943_s21 }
  0x3f   :  { %p950_p2 = por %p949_p1, %p948_p0 }
  0x41   :  { %p951_p3 = pnand %p950_p2, %p944_p13 }
  0x43   :  { %954 = shalt.err (!%p951_p3)
}
  0x44   :  { %62 = dma.hbm_to_vmem [thread:$0]  %s1262_s3, 2048, %s57_s12, [#allocation9], %s1032_s7, %s1032_s7, %s1033_s8  }
  0x45   :  { %1021 = dma.done.wait [#allocation3], 128  }
  0x46   :  { %1022 = vsyncadd [#allocation3], 4294967168 }
  0x47   :  { %1023 = dma.done.wait [#allocation6], 4096  }
  0x48   :  { %1024 = vsyncadd [#allocation6], 4294963200 }
  0x49   :  { %1025 = dma.done.wait [#allocation9], 2048  }
  0x4a   :  { %1026 = vsyncadd [#allocation9], 4294965248  ;;  %v1037_v0 = vmov 0.0|0.0   ;;  %vm1038_vm0 = vmmov 0   ;;  %v1039_v1 = vmov 0.0   ;;  %v76_v2 = vld [vmem:[#allocation5] sm:$0xff]  ;;  %v162_v30 = vlaneseq }
  0x4b   :  { %755 = vmatprep.subr.bf16.mxu0 %v1037_v0  ;;  %647 = vmatprep.mubr.msk.f32.mxu0 %vm1038_vm0, %v1039_v1  ;;  %v77_v3 = vld [vmem:[#allocation5 + $0x8] sm:$0xff]  ;;  %v78_v4 = vld [vmem:[#allocation5 + $0x10] sm:$0xff]  ;;  %v79_v6 = vld [vmem:[#allocation5 + $0x18] sm:$0xff]  ;;  %s1040_s3 = smov [#allocation10]  }
  0x4c   :  { %779 = vmatprep.subr.bf16.mxu1 %v1037_v0  ;;  %682 = vmatprep.mubr.msk.f32.mxu1 %vm1038_vm0, %v1039_v1  ;;  %v756_v5 = vpack.c.bf16 %v77_v3, %v76_v2  ;;  %v759_v7 = vpack.c.bf16 %v79_v6, %v78_v4  ;;  %v80_v8 = vld [vmem:[#allocation5 + $0x20] sm:$0xff]  ;;  %v81_v9 = vld [vmem:[#allocation5 + $0x28] sm:$0xff]  ;;  %v82_v11 = vld [vmem:[#allocation5 + $0x30] sm:$0xff]  ;;  %v1157_v31 = vand.u32 127, %v162_v30  ;;  %s506_s7 = sshll.u32 %s1040_s3, 4  ;;  %s507_s7 = int_to_ptr.vmem [resolvable:$true] %s506_s7 }
  0x4d   :  { %v762_v10 = vpack.c.bf16 %v81_v9, %v80_v8  ;;  %v83_v12 = vld [vmem:[#allocation5 + $0x38] sm:$0xff]  ;;  %v84_v14 = vld [vmem:[#allocation5 + $0x40] sm:$0xff]  ;;  %v85_v15 = vld [vmem:[#allocation5 + $0x48] sm:$0xff]  ;;  %s955_s8 = scalar_lea.vmem %s507_s7, 128  ;;  %p960_p5 = scmp.lt.s32.totalorder %s507_s7, %s507_s7 }
  0x4e   :  { %757 = vmatpush3.bf16.msra.mxu0 %v756_v5  ;;  %v765_v13 = vpack.c.bf16 %v83_v12, %v82_v11  ;;  %v768_v16 = vpack.c.bf16 %v85_v15, %v84_v14  ;;  %v86_v17 = vld [vmem:[#allocation5 + $0x50] sm:$0xff]  ;;  %v87_v18 = vld [vmem:[#allocation5 + $0x58] sm:$0xff]  ;;  %v88_v20 = vld [vmem:[#allocation5 + $0x60] sm:$0xff]  ;;  %p956_p4 = scmp.ne.s32.totalorder %s507_s7, %s955_s8  ;;  %p961_p6 = scmp.lt.s32.totalorder %s955_s8, %s955_s8 }
  0x4f   :  { %758 = vmatprep.subr.bf16.mxu0 %v1037_v0  ;;  %v771_v19 = vpack.c.bf16 %v87_v18, %v86_v17  ;;  %v89_v21 = vld [vmem:[#allocation5 + $0x68] sm:$0xff]  ;;  %v90_v23 = vld [vmem:[#allocation5 + $0x70] sm:$0xff]  ;;  %v91_v24 = vld [vmem:[#allocation5 + $0x78] sm:$0xff] }
  0x50   :  { %v774_v22 = vpack.c.bf16 %v89_v21, %v88_v20  ;;  %v777_v25 = vpack.c.bf16 %v91_v24, %v90_v23  ;;  %v1148_v26 = vld [vmem:[#allocation2] sm:$0xff]  ;;  %v185_v36 = vld [vmem:[#allocation8] sm:$0xff]  ;;  %v186_v37 = vld [vmem:[#allocation8 + $0x8] sm:$0xff]  ;;  %p962_p7 = por %p961_p6, %p960_p5 }
  0x51   :  { %v187_v38 = vld [vmem:[#allocation8 + $0x10] sm:$0xff]  ;;  %v780_v39 = vpack.c.bf16 %v186_v37, %v185_v36  ;;  %v188_v40 = vld [vmem:[#allocation8 + $0x18] sm:$0xff]  ;;  %v189_v42 = vld [vmem:[#allocation8 + $0x20] sm:$0xff] }
  0x52   :  { %760 = vmatpush3.bf16.msra.mxu0 %v759_v7  ;;  %v783_v41 = vpack.c.bf16 %v188_v40, %v187_v38  ;;  %v190_v43 = vld [vmem:[#allocation8 + $0x28] sm:$0xff]  ;;  %v191_v45 = vld [vmem:[#allocation8 + $0x30] sm:$0xff]  ;;  %v192_v46 = vld [vmem:[#allocation8 + $0x38] sm:$0xff]  ;;  %p963_p8 = pnand %p962_p7, %p956_p4 }
  0x53   :  { %761 = vmatprep.subr.bf16.mxu0 %v1037_v0  ;;  %781 = vmatpush3.bf16.msra.mxu1 %v780_v39  ;;  %v786_v44 = vpack.c.bf16 %v190_v43, %v189_v42  ;;  %v789_v47 = vpack.c.bf16 %v192_v46, %v191_v45  ;;  %v193_v48 = vld [vmem:[#allocation8 + $0x40] sm:$0xff]  ;;  %v194_v49 = vld [vmem:[#allocation8 + $0x48] sm:$0xff]  ;;  %v195_v51 = vld [vmem:[#allocation8 + $0x50] sm:$0xff] }
  0x54   :  { %782 = vmatprep.subr.bf16.mxu1 %v1037_v0  ;;  %v792_v50 = vpack.c.bf16 %v194_v49, %v193_v48  ;;  %v196_v52 = vld [vmem:[#allocation8 + $0x58] sm:$0xff]  ;;  %v197_v54 = vld [vmem:[#allocation8 + $0x60] sm:$0xff]  ;;  %v198_v55 = vld [vmem:[#allocation8 + $0x68] sm:$0xff] }
  0x55   :  { %v795_v53 = vpack.c.bf16 %v196_v52, %v195_v51  ;;  %v798_v56 = vpack.c.bf16 %v198_v55, %v197_v54  ;;  %v199_v61 = vld [vmem:[#allocation8 + $0x70] sm:$0xff]  ;;  %v200_v62 = vld [vmem:[#allocation8 + $0x78] sm:$0xff]  ;;  %v393_v40 = vld [vmem:[#allocation7 + $0x28] sm:$0xff] }
  0x56   :  { %763 = vmatpush3.bf16.msra.mxu0 %v762_v10  ;;  %v801_v63 = vpack.c.bf16 %v200_v62, %v199_v61  ;;  %v391_v37 = vld [vmem:[#allocation7 + $0x18] sm:$0xff]  ;;  %v394_v42 = vld [vmem:[#allocation7 + $0x30] sm:$0xff]  ;;  %v396_v45 = vld [vmem:[#allocation7 + $0x40] sm:$0xff] }
  0x57   :  { %764 = vmatprep.subr.bf16.mxu0 %v1037_v0  ;;  %784 = vmatpush3.bf16.msra.mxu1 %v783_v41  ;;  %v395_v43 = vld [vmem:[#allocation7 + $0x38] sm:$0xff]  ;;  %v397_v46 = vld [vmem:[#allocation7 + $0x48] sm:$0xff]  ;;  %v398_v48 = vld [vmem:[#allocation7 + $0x50] sm:$0xff] }
  0x58   :  { %785 = vmatprep.subr.bf16.mxu1 %v1037_v0  ;;  %v399_v49 = vld [vmem:[#allocation7 + $0x58] sm:$0xff]  ;;  %v400_v51 = vld [vmem:[#allocation7 + $0x60] sm:$0xff]  ;;  %v401_v52 = vld [vmem:[#allocation7 + $0x68] sm:$0xff] }
  0x5a   :  { %766 = vmatpush3.bf16.msra.mxu0 %v765_v13 }
  0x5b   :  { %767 = vmatprep.subr.bf16.mxu0 %v1037_v0  ;;  %787 = vmatpush3.bf16.msra.mxu1 %v786_v44 }
  0x5c   :  { %788 = vmatprep.subr.bf16.mxu1 %v1037_v0 }
  0x5e   :  { %769 = vmatpush3.bf16.msra.mxu0 %v768_v16 }
  0x5f   :  { %770 = vmatprep.subr.bf16.mxu0 %v1037_v0  ;;  %790 = vmatpush3.bf16.msra.mxu1 %v789_v47 }
  0x60   :  { %791 = vmatprep.subr.bf16.mxu1 %v1037_v0 }
  0x62   :  { %772 = vmatpush3.bf16.msra.mxu0 %v771_v19 }
  0x63   :  { %773 = vmatprep.subr.bf16.mxu0 %v1037_v0  ;;  %793 = vmatpush3.bf16.msra.mxu1 %v792_v50 }
  0x64   :  { %794 = vmatprep.subr.bf16.mxu1 %v1037_v0 }
  0x66   :  { %775 = vmatpush3.bf16.msra.mxu0 %v774_v22 }
  0x67   :  { %776 = vmatprep.subr.bf16.mxu0 %v1037_v0  ;;  %796 = vmatpush3.bf16.msra.mxu1 %v795_v53 }
  0x68   :  { %797 = vmatprep.subr.bf16.mxu1 %v1037_v0 }
  0x6a   :  { %778 = vmatpush3.bf16.msra.mxu0 %v777_v25 }
  0x6b   :  { %803 = vmatprep.subr.bf16.mxu0 %v1037_v0  ;;  %799 = vmatpush3.bf16.msra.mxu1 %v798_v56 }
  0x6c   :  { %800 = vmatprep.subr.bf16.mxu1 %v1037_v0 }
  0x6d   :  { %648 = vmatmul.mubr.f32.vlgmr.msra.gmra.mrb[0].mxu0 %v1148_v26 }
  0x6e   :  { %717 = vmatprep.mubr.msk.f32.mxu0 %vm1038_vm0, %v1039_v1  ;;  %805 = vmatpush3.bf16.msra.mxu0 %v780_v39  ;;  %v392_v39 = vld [vmem:[#allocation7 + $0x20] sm:$0xff] }
  0x6f   :  { %806 = vmatprep.subr.bf16.mxu0 %v1037_v0  ;;  %802 = vmatpush3.bf16.msra.mxu1 %v801_v63 }
  0x70   :  { %827 = vmatprep.subr.bf16.mxu1 %v1037_v0 }
  0x72   :  { %808 = vmatpush3.bf16.msra.mxu0 %v783_v41  ;;  %v834_v41 = vpack.c.bf16 %v393_v40, %v392_v39 }
  0x73   :  { %809 = vmatprep.subr.bf16.mxu0 %v1037_v0 }
  0x76   :  { %811 = vmatpush3.bf16.msra.mxu0 %v786_v44  ;;  %v837_v44 = vpack.c.bf16 %v395_v43, %v394_v42 }
  0x77   :  { %812 = vmatprep.subr.bf16.mxu0 %v1037_v0 }
  0x7a   :  { %814 = vmatpush3.bf16.msra.mxu0 %v789_v47  ;;  %v840_v47 = vpack.c.bf16 %v397_v46, %v396_v45 }
  0x7b   :  { %815 = vmatprep.subr.bf16.mxu0 %v1037_v0 }
  0x7e   :  { %817 = vmatpush3.bf16.msra.mxu0 %v792_v50  ;;  %v843_v50 = vpack.c.bf16 %v399_v49, %v398_v48 }
  0x7f   :  { %818 = vmatprep.subr.bf16.mxu0 %v1037_v0 }
  0x82   :  { %820 = vmatpush3.bf16.msra.mxu0 %v795_v53  ;;  %v846_v53 = vpack.c.bf16 %v401_v52, %v400_v51 }
  0x83   :  { %821 = vmatprep.subr.bf16.mxu0 %v1037_v0 }
  0x86   :  { %823 = vmatpush3.bf16.msra.mxu0 %v798_v56 }
  0x87   :  { %824 = vmatprep.subr.bf16.mxu0 %v1037_v0 }
  0x8a   :  { %826 = vmatpush3.bf16.msra.mxu0 %v801_v63 }
 0x140   :  { %v1154_v27 = vpop.f32.mrb[0].mxu0 }
 0x141   :  { %v649_v28 = vpop.f32.mrb[1].mxu0  ;;  %v164_v29 = vand.u32 2147483647, %v1154_v27 }
 0x143   :  { %165 = vmax.xlane.f32.xlu0 %v164_v29 }
 0x1d0   :  { %v166_v32 = vpop.xlane.xlu0 %165 }
 0x1d1   :  { %vm167_vm1 = vcmp.eq.f32.partialorder %v164_v29, %v166_v32 }
 0x1d2   :  { %v168_v33 = vsel %vm167_vm1, %v1157_v31, 128 }
 0x1d3   :  { %v170_v34 = vshra.s32 %v168_v33, 16  ;;  %v169_v57 = vand.u32 65535, %v168_v33  ;;  %v388_v33 = vld [vmem:[#allocation7] sm:$0xff] }
 0x1d5   :  { %v172_v35 = vcvt.s32.f32 %v170_v34  ;;  %v171_v59 = vcvt.s32.f32 %v169_v57  ;;  %v389_v34 = vld [vmem:[#allocation7 + $0x8] sm:$0xff] }
 0x1d6   :  { %v828_v36 = vpack.c.bf16 %v389_v34, %v388_v33 }
 0x1d7   :  { %173 = vmin.xlane.f32.xlu0 %v172_v35 }
 0x264   :  { %v174_v58 = vpop.xlane.xlu0 %173 }
 0x265   :  { %vm175_vm2 = vcmp.eq.f32.partialorder %v172_v35, %v174_v58  ;;  %v180_v2 = vcvt.f32.s32 %v174_v58  ;;  %v390_v35 = vld [vmem:[#allocation7 + $0x10] sm:$0xff] }
 0x266   :  { %v176_v60 = vsel %vm175_vm2, %v171_v59, inf  ;;  %v831_v38 = vpack.c.bf16 %v391_v37, %v390_v35  ;;  %v402_v58 = vld [vmem:[#allocation7 + $0x70] sm:$0xff]  ;;  %v403_v59 = vld [vmem:[#allocation7 + $0x78] sm:$0xff] }
 0x267   :  { %177 = vmin.xlane.f32.xlu1 %v176_v60  ;;  %v181_v4 = vshll.u32 %v180_v2, 16  ;;  %v849_v60 = vpack.c.bf16 %v403_v59, %v402_v58 }
 0x2f4   :  { %v178_v3 = vpop.xlane.xlu1 %177 }
 0x2f5   :  { %v179_v5 = vcvt.f32.s32 %v178_v3 }
 0x2f7   :  { %v1175_v6 = vadd.s32 %v181_v4, %v179_v5 }
 0x2f9   :  { %vm183_vm3 = vcmp.eq.s32.totalorder %v1157_v31, %v1175_v6 }
 0x2fa   :  { %683 = vmatmul.mubr.msk.f32.vlgmr.msra.gmra.mrb[0].mxu1 %vm183_vm3, %v1154_v27 }
 0x2fb   :  { %752 = vmatprep.mubr.msk.f32.mxu1 %vm1038_vm0, %v1039_v1  ;;  %829 = vmatpush3.bf16.msra.mxu1 %v828_v36 }
 0x2fc   :  { %830 = vmatprep.subr.bf16.mxu1 %v1037_v0 }
 0x2ff   :  { %832 = vmatpush3.bf16.msra.mxu1 %v831_v38 }
 0x300   :  { %833 = vmatprep.subr.bf16.mxu1 %v1037_v0 }
 0x303   :  { %835 = vmatpush3.bf16.msra.mxu1 %v834_v41 }
 0x304   :  { %836 = vmatprep.subr.bf16.mxu1 %v1037_v0 }
 0x307   :  { %838 = vmatpush3.bf16.msra.mxu1 %v837_v44 }
 0x308   :  { %839 = vmatprep.subr.bf16.mxu1 %v1037_v0 }
 0x30b   :  { %841 = vmatpush3.bf16.msra.mxu1 %v840_v47 }
 0x30c   :  { %842 = vmatprep.subr.bf16.mxu1 %v1037_v0 }
 0x30f   :  { %844 = vmatpush3.bf16.msra.mxu1 %v843_v50 }
 0x310   :  { %845 = vmatprep.subr.bf16.mxu1 %v1037_v0 }
 0x313   :  { %847 = vmatpush3.bf16.msra.mxu1 %v846_v53 }
 0x314   :  { %848 = vmatprep.subr.bf16.mxu1 %v1037_v0 }
 0x317   :  { %850 = vmatpush3.bf16.msra.mxu1 %v849_v60 }
 0x3cd   :  { %v267_v7 = vpop.f32.mrb[0].mxu1 }
 0x3ce   :  { %v271_v8 = vsub.f32 %v1154_v27, %v267_v7  ;;  %v684_v9 = vpop.f32.mrb[1].mxu1 }
 0x3d0   :  { %v272_v10 = vand.u32 2147483647, %v271_v8 }
 0x3d2   :  { %273 = vmax.xlane.f32.xlu1 %v272_v10 }
 0x45f   :  { %v274_v11 = vpop.xlane.xlu1 %273 }
 0x460   :  { %vm275_vm4 = vcmp.eq.f32.partialorder %v272_v10, %v274_v11 }
 0x461   :  { %v276_v12 = vsel %vm275_vm4, %v1157_v31, 128 }
 0x462   :  { %v278_v13 = vshra.s32 %v276_v12, 16  ;;  %v277_v15 = vand.u32 65535, %v276_v12 }
 0x464   :  { %v280_v14 = vcvt.s32.f32 %v278_v13  ;;  %v279_v17 = vcvt.s32.f32 %v277_v15 }
 0x466   :  { %281 = vmin.xlane.f32.xlu0 %v280_v14 }
 0x4f3   :  { %v282_v16 = vpop.xlane.xlu0 %281 }
 0x4f4   :  { %vm283_vm5 = vcmp.eq.f32.partialorder %v280_v14, %v282_v16  ;;  %v288_v1 = vcvt.f32.s32 %v282_v16 }
 0x4f5   :  { %v284_v18 = vsel %vm283_vm5, %v279_v17, inf }
 0x4f6   :  { %285 = vmin.xlane.f32.xlu1 %v284_v18  ;;  %v289_v20 = vshll.u32 %v288_v1, 16 }
 0x583   :  { %v286_v19 = vpop.xlane.xlu1 %285 }
 0x584   :  { %v287_v21 = vcvt.f32.s32 %v286_v19 }
 0x586   :  { %v1187_v22 = vadd.s32 %v289_v20, %v287_v21 }
 0x588   :  { %vm291_vm6 = vcmp.eq.s32.totalorder %v1157_v31, %v1187_v22 }
 0x589   :  { %718 = vmatmul.mubr.msk.f32.vlgmr.msra.gmra.mrb[2].mxu0 %vm291_vm6, %v271_v8  ;;  %vm292_vm9 = vmor %vm183_vm3, %vm291_vm6 }
 0x65c   :  { %v360_v23 = vpop.f32.mrb[2].mxu0 }
 0x65d   :  { %v1194_v24 = vsub.f32 %v271_v8, %v360_v23  ;;  %v719_v25 = vpop.f32.mrb[3].mxu0 }
 0x65f   :  { %v365_v27 = vand.u32 2147483647, %v1194_v24 }
 0x661   :  { %366 = vmax.xlane.f32.xlu0 %v365_v27 }
 0x6ee   :  { %v367_v28 = vpop.xlane.xlu0 %366 }
 0x6ef   :  { %vm368_vm7 = vcmp.eq.f32.partialorder %v365_v27, %v367_v28 }
 0x6f0   :  { %v369_v29 = vsel %vm368_vm7, %v1157_v31, 128 }
 0x6f1   :  { %v371_v30 = vshra.s32 %v369_v29, 16  ;;  %v370_v54 = vand.u32 65535, %v369_v29 }
 0x6f3   :  { %v373_v32 = vcvt.s32.f32 %v371_v30  ;;  %v372_v56 = vcvt.s32.f32 %v370_v54 }
 0x6f5   :  { %374 = vmin.xlane.f32.xlu1 %v373_v32 }
 0x782   :  { %v375_v55 = vpop.xlane.xlu1 %374 }
 0x783   :  { %vm376_vm8 = vcmp.eq.f32.partialorder %v373_v32, %v375_v55  ;;  %v381_v61 = vcvt.f32.s32 %v375_v55 }
 0x784   :  { %v377_v57 = vsel %vm376_vm8, %v372_v56, inf }
 0x785   :  { %378 = vmin.xlane.f32.xlu0 %v377_v57  ;;  %v382_v63 = vshll.u32 %v381_v61, 16 }
 0x812   :  { %v379_v62 = vpop.xlane.xlu0 %378 }
 0x813   :  { %v380_v2 = vcvt.f32.s32 %v379_v62 }
 0x815   :  { %v383_v3 = vadd.s32 %v382_v63, %v380_v2 }
 0x817   :  { %vm384_vm10 = vcmp.eq.s32.totalorder %v1157_v31, %v383_v3 }
 0x818   :  { %vm385_vm11 = vmor %vm292_vm9, %vm384_vm10 }
 0x819   :  { %753 = vmatmul.mubr.msk.f32.vlgmr.msra.gmra.mrb[2].mxu1 %vm385_vm11, %v1194_v24  ;;  %v386_v0 = vsel %vm385_vm11, %v1194_v24, 0.0 }
 0x81a   :  { %v488_v4 = vand.u32 2147483647, %v386_v0  ;;  %387 = vst [vmem:[#allocation10] sm:$0xff] %v386_v0 }
 0x81c   :  { %489 = vadd.xlane.f32.xlu0 %v488_v4 }
 0x8ec   :  { %v470_v5 = vpop.f32.mrb[2].mxu1 }
 0x8ed   :  { %v475_v7 = vsub.f32 %v470_v5, %v1148_v26  ;;  %v754_v8 = vpop.f32.mrb[3].mxu1 }
 0x8ef   :  { %v476_v9 = vmul.f32 %v475_v7, %v475_v7 }
 0x8f1   :  { %477 = vadd.xlane.f32.xlu1 %v476_v9 }
 0x8f2   :  { %966 = shalt.err (!%p963_p8)
}
 0x8f3   :  { %s967_s23 = scalar_lea.hbm %s1263_s4, 128 }
 0x8f4   :  { %p968_p9 = scmp.ne.s32.totalorder %s1263_s4, %s967_s23  ;;  %p971_p10 = scmp.lt.u32.totalorder %s967_s23, %s1263_s4 }
 0x8f6   :  { %p973_p11 = pnand %p971_p10, %p968_p9 }
 0x8f8   :  { %976 = shalt.err (!%p973_p11)
}
 0x8f9   :  { %509 = dma.vmem_to_hbm [thread:$0]  %s507_s7, 128, %s1263_s4, [#allocation4]   ;;  %v490_v26 = vpop.xlane.xlu0 %489 }
 0x8fa   :  { %v491_v31 = vrot.slane %v490_v26, 4  ;;  %s1041_s30 = smov [#allocation11]   ;;  %s1042_s0 = smov [#allocation13]  }
 0x8fb   :  { %s516_s9 = sshll.u32 %s1041_s30, 4  ;;  %s526_s4 = sshll.u32 %s1042_s0, 4  ;;  %s517_s9 = int_to_ptr.vmem [resolvable:$true] %s516_s9  ;;  %s1227_s4 = int_to_ptr.vmem [resolvable:$true] %s526_s4 }
 0x8fc   :  { %v492_v6 = vadd.f32 %v491_v31, %v490_v26  ;;  %s977_s12 = scalar_lea.vmem %s517_s9, 16  ;;  %s981_s13 = scalar_lea.vmem %s517_s9, 32 }
 0x8fd   :  { %p978_p12 = scmp.ne.s32.totalorder %s517_s9, %s977_s12  ;;  %p982_p13 = scmp.lt.s32.totalorder %s517_s9, %s517_s9 }
 0x8fe   :  { %v493_v10 = vrot.slane %v492_v6, 2  ;;  %p983_p0 = scmp.lt.s32.totalorder %s981_s13, %s977_s12 }
 0x900   :  { %v494_v14 = vadd.f32 %v493_v10, %v492_v6  ;;  %p984_p1 = por %p983_p0, %p982_p13 }
 0x902   :  { %v495_v17 = vrot.slane %v494_v14, 1  ;;  %p985_p2 = pnand %p984_p1, %p978_p12 }
 0x904   :  { %v496_v19 = vadd.f32 %v495_v17, %v494_v14 }
 0x97e   :  { %v478_v11 = vpop.xlane.xlu1 %477 }
 0x97f   :  { %v479_v12 = vrot.slane %v478_v11, 4 }
 0x981   :  { %v480_v13 = vadd.f32 %v479_v12, %v478_v11 }
 0x983   :  { %v481_v15 = vrot.slane %v480_v13, 2 }
 0x985   :  { %v482_v16 = vadd.f32 %v481_v15, %v480_v13 }
 0x987   :  { %v483_v18 = vrot.slane %v482_v16, 1 }
 0x989   :  { %v484_v1 = vadd.f32 %v483_v18, %v482_v16 }
 0x98b   :  { %851 = vpush %v484_v1 }
 0x98c   :  { %853 = vpush %v496_v19 }
 0x9bc   :  { %s852_s10 = spop %851 }
 0x9bd   :  { %v486_v20 = vstv %s852_s10  ;;  %s854_s11 = spop %853 }
 0x9be   :  { %487 = vst [vmem:[#allocation11] sm:$0x1] %v486_v20  ;;  %v498_v21 = vstv %s854_s11 }
 0x9bf   :  { %499 = vst [vmem:[#allocation13] sm:$0x1] %v498_v21 }
 0x9c0   :  { %988 = shalt.err (!%p985_p2)
}
 0x9c1   :  { %s989_s17 = scalar_lea.hbm %s1264_s5, 16 }
 0x9c2   :  { %p990_p3 = scmp.ne.s32.totalorder %s1264_s5, %s989_s17  ;;  %p993_p4 = scmp.lt.u32.totalorder %s989_s17, %s1264_s5 }
 0x9c4   :  { %p995_p5 = pnand %p993_p4, %p990_p3 }
 0x9c6   :  { %998 = shalt.err (!%p995_p5)
}
 0x9c7   :  { %519 = dma.vmem_to_hbm [thread:$0]  %s517_s9, 16, %s1264_s5, [#allocation12]  }
 0x9c8   :  { %s999_s3 = scalar_lea.vmem %s1227_s4, 16  ;;  %s1003_s7 = scalar_lea.vmem %s1227_s4, 32 }
 0x9c9   :  { %p1000_p6 = scmp.ne.s32.totalorder %s1227_s4, %s999_s3  ;;  %p1004_p7 = scmp.lt.s32.totalorder %s1227_s4, %s1227_s4 }
 0x9ca   :  { %p1005_p8 = scmp.lt.s32.totalorder %s1003_s7, %s999_s3 }
 0x9cc   :  { %p1006_p9 = por %p1005_p8, %p1004_p7 }
 0x9ce   :  { %p1007_p10 = pnand %p1006_p9, %p1000_p6 }
 0x9d0   :  { %1010 = shalt.err (!%p1007_p10)
}
 0x9d1   :  { %s1011_s22 = scalar_lea.hbm %s1265_s6, 16 }
 0x9d2   :  { %p1012_p11 = scmp.ne.s32.totalorder %s1265_s6, %s1011_s22  ;;  %p1015_p12 = scmp.lt.u32.totalorder %s1011_s22, %s1265_s6 }
 0x9d4   :  { %p1017_p13 = pnand %p1015_p12, %p1012_p11 }
 0x9d6   :  { %1020 = shalt.err (!%p1017_p13)
}
 0x9d7   :  { %529 = dma.vmem_to_hbm [thread:$0]  %s1227_s4, 16, %s1265_s6, [#allocation12]  }
 0x9d8   :  { %1027 = dma.done.wait [#allocation4], 128  }
 0x9d9   :  { %1028 = vsyncadd [#allocation4], 4294967168 }
 0x9da   :  { %1029 = dma.done.wait [#allocation12], 32  }
 0x9db   :  { %1030 = vsyncadd [#allocation12], 4294967264 }
 0x9dc   :  { %539 = vsyncpa [#allocation3], 1 }
 0x9dd   :  { %540 = vsyncpa [#allocation6], 1 }
 0x9de   :  { %541 = vsyncpa [#allocation9], 1 }
 0x9df   :  { %542 = vsyncpa [#allocation4], 1 }
 0x9e0   :  { %543 = vsyncpa [#allocation12], 1 }

</bundles_post_ra>
